<compile_context>
chip_gen: v7x
topology: tpu7x:2x2x1
jax: 0.10.0
libtpu: 0.0.40
codegen_flags: <defaults>
</compile_context>

<pallas_src>
import functools

import jax
import jax.numpy as jnp
from jax import lax
from jax.experimental import pallas as pl
from jax.experimental.pallas import tpu as pltpu


_VMEM_WORKING_SET_BUDGET = 12 * 1024 * 1024   # bytes used to size the tile
_VMEM_LIMIT_BYTES = 32 * 1024 * 1024          # explicit scoped-VMEM limit (safe on v5e/v6e/v7x)


def _focal_partial_kernel(x_ref, t_ref, o_ref, acc_ref, *, n_total, tiles_per_part):
    """Accumulates sum(log p_t) over one batch partition, writes the partial sum."""
    p = pl.program_id(0)          # partition (TensorCore) axis — "parallel"
    i = pl.program_id(1)          # tile axis within the partition — "arbitrary"
    n_tiles = pl.num_programs(1)

    @pl.when(i == 0)
    def _():
        acc_ref[...] = jnp.zeros_like(acc_ref)

    x = x_ref[...]                       # (TN, C) logits, kept in the input dtype
    tgt = t_ref[...]                     # (TN, 1) int32 class indices
    tn, c = x.shape

    # True row ids for masking remainder / overhang tiles (mean divides by true N).
    tile_idx = p * tiles_per_part + i
    row_ids = tile_idx * tn + lax.broadcasted_iota(jnp.int32, (tn, 1), 0)
    valid = row_ids < n_total

    # Numerically stable log-softmax with the target gather fused into the shifted
    # values.  max / subtract / one-hot select stay in the input dtype (bf16 VPU is
    # native on v6e/v7x); f32 only at the exp / accumulation boundary.
    m = jnp.max(x, axis=-1, keepdims=True)                  # (TN, 1)
    z = x - m                                               # (TN, C)
    cls_ids = lax.broadcasted_iota(jnp.int32, (tn, c), 1)   # (TN, C)
    onehot = cls_ids == tgt                                 # (TN, C)
    # Exactly one non-zero per row, so this lane-sum "gather" is exact in any dtype.
    # NOTE: out-of-range targets match nothing -> logpt = -logsumexp (no error).
    z_t = jnp.sum(jnp.where(onehot, z, jnp.zeros_like(z)), axis=-1, keepdims=True)
    # TODO(synk): optionally run exp in bf16 (with f32 accumulation) on v7x where EUP binds.
    sum_exp = jnp.sum(jnp.exp(z.astype(jnp.float32)), axis=-1, keepdims=True)

    logpt_per = z_t.astype(jnp.float32) - jnp.log(sum_exp)  # (TN, 1) f32
    acc_ref[...] += jnp.where(valid, logpt_per, 0.0)        # vector add, no x-lane reduce

    @pl.when(i == n_tiles - 1)
    def _():
        # One cross-sublane reduce per partition; splat into a lane-dense (8,128) block.
        o_ref[...] = jnp.broadcast_to(jnp.sum(acc_ref[...]), o_ref.shape)


def _pick_block_rows(n, c, itemsize, budget_bytes=_VMEM_WORKING_SET_BUDGET):
    """Rows per tile, sized from the in-kernel working set (not just input bytes).

    Per-row VMEM cost (conservative):
      2x double-buffered logits tiles at the input dtype .... 2*C*itemsize
      2x double-buffered (TN,1) target tiles (lane-padded) .. 2*128*4
      f32 temporaries of the (TN,C) working set (z, exp) .... C*itemsize + 2*C*4
      (TN,1) f32 row vectors + accumulator (lane-padded) .... 6*128*4
    No max-row cap: small-C shapes get large tiles; the fixed ~3.5 KiB of
    lane-padded per-row cost bounds TN naturally.
    """
    per_row = 2 * c * itemsize + 2 * 512 + (c * itemsize + 2 * c * 4) + 6 * 512
    rows = (budget_bytes // per_row) // 8 * 8
    return max(8, int(rows))


def focal_loss(logits, target, *, gamma=2.0, alpha=0.25, block_rows=None):
    """logits: (N, C) float (f32/bf16); target: (N,) int class indices. Scalar f32.

    Matches the PyTorch module: the focal modulation is applied to the *mean*
    cross entropy (not per-sample).
    """
    n, c = logits.shape
    target2d = target.astype(jnp.int32).reshape(n, 1)
    itemsize = jnp.dtype(logits.dtype).itemsize

    if block_rows is None:
        block_rows = _pick_block_rows(n, c, itemsize)
    else:
        block_rows = max(8, (int(block_rows) // 8) * 8)
    tn = n if n <= block_rows else block_rows        # multiple of 8, or the full N

    total_tiles = pl.cdiv(n, tn)
    # Split the batch across 2 TensorCores (v7x megacore).  On 1-TC chips the extra
    # "parallel" axis is a cheap serial loop; only split when the clamped overhang
    # tile (odd tile counts) costs little extra HBM traffic.
    if total_tiles >= 2 and (total_tiles % 2 == 0 or total_tiles >= 8):
        num_parts = 2
    else:
        num_parts = 1
    tiles_per_part = pl.cdiv(total_tiles, num_parts)
    last_block = total_tiles - 1

    def row_block(p_, i_):
        # Clamp so overhang grid steps never index past the last real block
        # (their rows are masked out in-kernel anyway).
        return jnp.minimum(p_ * tiles_per_part + i_, last_block)

    kernel = functools.partial(
        _focal_partial_kernel, n_total=n, tiles_per_part=tiles_per_part)

    cost = pl.CostEstimate(
        flops=5 * n * c,
        transcendentals=n * c,
        bytes_accessed=n * c * itemsize + n * 4 + num_parts * 8 * 128 * 4,
    )

    partials = pl.pallas_call(
        kernel,
        out_shape=jax.ShapeDtypeStruct((num_parts, 8, 128), jnp.float32),
        grid_spec=pltpu.PrefetchScalarGridSpec(
            num_scalar_prefetch=0,
            grid=(num_parts, tiles_per_part),
            in_specs=[
                pl.BlockSpec((tn, c), lambda p_, i_: (row_block(p_, i_), 0)),
                # TODO(synk): deliver targets lane-dense ((1, TN) blocks) to drop the
                # 128-lane padding of this buffer; needs an in-kernel relayout.
                pl.BlockSpec((tn, 1), lambda p_, i_: (row_block(p_, i_), 0)),
            ],
            out_specs=pl.BlockSpec((1, 8, 128), lambda p_, i_: (p_, 0, 0)),
            scratch_shapes=[pltpu.VMEM((tn, 1), jnp.float32)],
        ),
        compiler_params=pltpu.CompilerParams(
            dimension_semantics=("parallel", "arbitrary"),
            vmem_limit_bytes=_VMEM_LIMIT_BYTES,
        ),
        cost_estimate=cost,
    )(logits, target2d)

    # Tiny focal finalization in the wrapper (keeps the two cores fully independent).
    sum_logpt = jnp.sum(partials[:, 0, 0])
    ce = -sum_logpt / jnp.float32(n)          # mean cross entropy over the true N
    logpt = -ce
    pt = jnp.exp(logpt)
    return (-alpha * (1.0 - pt) ** gamma * logpt).astype(jnp.float32)


def _focal_loss_ref(logits, target, *, gamma=2.0, alpha=0.25):
    lse = jax.nn.logsumexp(logits.astype(jnp.float32), axis=-1)
    logit_t = jnp.take_along_axis(
        logits.astype(jnp.float32), target[:, None], axis=-1
    )[:, 0]
    ce = jnp.mean(lse - logit_t)
    logpt = -ce
    pt = jnp.exp(logpt)
    return -alpha * (1.0 - pt) ** gamma * logpt


if __name__ == "__main__":
    key = jax.random.PRNGKey(0)
    kx, kt = jax.random.split(key)

    # Small shapes consistent with F.cross_entropy((N, C), (N,)).
    N, C = 8, 16
    logits = jax.random.normal(kx, (N, C), dtype=jnp.float32)
    target = jax.random.randint(kt, (N,), 0, C, dtype=jnp.int32)

    loss = jax.block_until_ready(focal_loss(logits, target, gamma=2.0, alpha=0.25))
    ref = _focal_loss_ref(logits, target, gamma=2.0, alpha=0.25)
    assert jnp.allclose(loss, ref, atol=1e-5, rtol=1e-5), (loss, ref)

    # Multi-tile path: remainder tile + the 2-partition (megacore-safe) split.
    kx2, kt2 = jax.random.split(jax.random.PRNGKey(1))
    N2, C2 = 1000, 160
    logits2 = jax.random.normal(kx2, (N2, C2), dtype=jnp.float32)
    target2 = jax.random.randint(kt2, (N2,), 0, C2, dtype=jnp.int32)
    loss2 = jax.block_until_ready(
        focal_loss(logits2, target2, gamma=2.0, alpha=0.25, block_rows=256))
    ref2 = _focal_loss_ref(logits2, target2, gamma=2.0, alpha=0.25)
    assert jnp.allclose(loss2, ref2, atol=1e-4, rtol=1e-5), (loss2, ref2)

    # bf16 logits exercise the input-dtype (no upfront f32 cast) path.
    logits3 = logits2.astype(jnp.bfloat16)
    loss3 = jax.block_until_ready(
        focal_loss(logits3, target2, gamma=2.0, alpha=0.25, block_rows=256))
    ref3 = _focal_loss_ref(logits3, target2, gamma=2.0, alpha=0.25)
    assert jnp.allclose(loss3, ref3, atol=3e-2, rtol=3e-2), (loss3, ref3)

    print("KERNEL_OK")
</pallas_src>

<mosaic_0001>
module attributes {stable_mosaic.version = 11 : i64} {
  func.func @_focal_partial_kernel(%arg0: i32, %arg1: i32, %arg2: memref<8x16xf32, #tpu.memory_space<vmem>>, %arg3: memref<8x1xi32, #tpu.memory_space<vmem>>, %arg4: memref<1x8x128xf32, #tpu.memory_space<vmem>>, %arg5: memref<8x1xf32, #tpu.memory_space<vmem>>) attributes {dimension_semantics = [#tpu.dimension_semantics<parallel>, #tpu.dimension_semantics<arbitrary>], iteration_bounds = array<i64: 1, 1>, scalar_prefetch = 0 : i64, scratch_operands = 1 : i64, tpu.core_type = #tpu.core_type<tc>, window_params = [{transform_indices = @transform_0, window_bounds = array<i64: 8, 16>}, {transform_indices = @transform_1, window_bounds = array<i64: 8, 1>}, {transform_indices = @transform_2, window_bounds = array<i64: 1, 8, 128>}]} {
    %c0_i32 = arith.constant 0 : i32
    %0 = arith.cmpi eq, %arg1, %c0_i32 : i32
    %1 = arith.extui %0 : i1 to i32
    %c0_i32_0 = arith.constant 0 : i32
    %2 = arith.cmpi ne, %1, %c0_i32_0 : i32
    scf.if %2 {
      %cst_15 = arith.constant 0.000000e+00 : f32
      %37 = vector.broadcast %cst_15 : f32 to vector<8x1xf32>
      %c0_16 = arith.constant 0 : index
      %c0_17 = arith.constant 0 : index
      %38 = vector.load %arg5[%c0_16, %c0_17] : memref<8x1xf32, #tpu.memory_space<vmem>>, vector<8x1xf32>
      tpu.vector_store %arg5[%c0_16, %c0_17], %37 {strides = array<i32>} : memref<8x1xf32, #tpu.memory_space<vmem>>, vector<8x1xf32>,
    } else {
    }
    %c0 = arith.constant 0 : index
    %c0_1 = arith.constant 0 : index
    %3 = vector.load %arg2[%c0, %c0_1] : memref<8x16xf32, #tpu.memory_space<vmem>>, vector<8x16xf32>
    %c0_2 = arith.constant 0 : index
    %c0_3 = arith.constant 0 : index
    %4 = vector.load %arg3[%c0_2, %c0_3] : memref<8x1xi32, #tpu.memory_space<vmem>>, vector<8x1xi32>
    %c1_i32 = arith.constant 1 : i32
    %5 = arith.muli %arg0, %c1_i32 : i32
    %6 = arith.addi %5, %arg1 : i32
    %c8_i32 = arith.constant 8 : i32
    %7 = arith.muli %6, %c8_i32 : i32
    %8 = tpu.iota {dimensions = array<i32: 0>} : vector<8x1xi32>
    %9 = vector.broadcast %7 : i32 to vector<8x1xi32>
    %10 = arith.addi %9, %8 : vector<8x1xi32>
    %c8_i32_4 = arith.constant 8 : i32
    %11 = vector.broadcast %c8_i32_4 : i32 to vector<8x1xi32>
    %12 = arith.cmpi slt, %10, %11 : vector<8x1xi32>
    %cst = arith.constant dense<0xFF800000> : vector<8xf32>
    %13 = vector.multi_reduction <maximumf>, %3, %cst [1] : vector<8x16xf32> to vector<8xf32>
    %14 = vector.shape_cast %13 : vector<8xf32> to vector<8x1xf32>
    %15 = vector.broadcast %14 : vector<8x1xf32> to vector<8x16xf32>
    %16 = arith.subf %3, %15 : vector<8x16xf32>
    %17 = tpu.iota {dimensions = array<i32: 1>} : vector<8x16xi32>
    %18 = vector.broadcast %4 : vector<8x1xi32> to vector<8x16xi32>
    %19 = arith.cmpi eq, %17, %18 : vector<8x16xi32>
    %cst_5 = arith.constant 0.000000e+00 : f32
    %20 = vector.broadcast %cst_5 : f32 to vector<8x16xf32>
    %21 = arith.select %19, %16, %20 : vector<8x16xi1>, vector<8x16xf32>
    %cst_6 = arith.constant dense<0.000000e+00> : vector<8xf32>
    %22 = vector.multi_reduction <add>, %21, %cst_6 [1] : vector<8x16xf32> to vector<8xf32>
    %23 = vector.shape_cast %22 : vector<8xf32> to vector<8x1xf32>
    %24 = math.exp %16 : vector<8x16xf32>
    %cst_7 = arith.constant dense<0.000000e+00> : vector<8xf32>
    %25 = vector.multi_reduction <add>, %24, %cst_7 [1] : vector<8x16xf32> to vector<8xf32>
    %26 = vector.shape_cast %25 : vector<8xf32> to vector<8x1xf32>
    %27 = math.log %26 : vector<8x1xf32>
    %28 = arith.subf %23, %27 : vector<8x1xf32>
    %c0_8 = arith.constant 0 : index
    %c0_9 = arith.constant 0 : index
    %29 = vector.load %arg5[%c0_8, %c0_9] : memref<8x1xf32, #tpu.memory_space<vmem>>, vector<8x1xf32>
    %cst_10 = arith.constant 0.000000e+00 : f32
    %30 = vector.broadcast %cst_10 : f32 to vector<8x1xf32>
    %31 = arith.select %12, %28, %30 : vector<8x1xi1>, vector<8x1xf32>
    %32 = arith.addf %29, %31 : vector<8x1xf32>
    %c0_11 = arith.constant 0 : index
    %c0_12 = arith.constant 0 : index
    %33 = vector.load %arg5[%c0_11, %c0_12] : memref<8x1xf32, #tpu.memory_space<vmem>>, vector<8x1xf32>
    tpu.vector_store %arg5[%c0_11, %c0_12], %32 {strides = array<i32>} : memref<8x1xf32, #tpu.memory_space<vmem>>, vector<8x1xf32>,
    %c0_i32_13 = arith.constant 0 : i32
    %34 = arith.cmpi eq, %arg1, %c0_i32_13 : i32
    %35 = arith.extui %34 : i1 to i32
    %c0_i32_14 = arith.constant 0 : i32
    %36 = arith.cmpi ne, %35, %c0_i32_14 : i32
    scf.if %36 {
      %c0_15 = arith.constant 0 : index
      %c0_16 = arith.constant 0 : index
      %37 = vector.load %arg5[%c0_15, %c0_16] : memref<8x1xf32, #tpu.memory_space<vmem>>, vector<8x1xf32>
      %38 = vector.shape_cast %37 : vector<8x1xf32> to vector<1x8x1xf32>
      %cst_17 = arith.constant dense<0.000000e+00> : vector<1xf32>
      %39 = vector.multi_reduction <add>, %38, %cst_17 [1, 2] : vector<1x8x1xf32> to vector<1xf32>
      %40 = vector.shape_cast %39 : vector<1xf32> to vector<1x1x1xf32>
      %41 = vector.extract %40[0, 0, 0] : f32 from vector<1x1x1xf32>
      %42 = vector.broadcast %41 : f32 to vector<1x8x128xf32>
      %c0_18 = arith.constant 0 : index
      %c0_19 = arith.constant 0 : index
      %c0_20 = arith.constant 0 : index
      %43 = vector.load %arg4[%c0_18, %c0_19, %c0_20] : memref<1x8x128xf32, #tpu.memory_space<vmem>>, vector<1x8x128xf32>
      tpu.vector_store %arg4[%c0_18, %c0_19, %c0_20], %42 {strides = array<i32>} : memref<1x8x128xf32, #tpu.memory_space<vmem>>, vector<1x8x128xf32>,
    } else {
    }
    return
  }
  func.func @transform_0(%arg0: i32, %arg1: i32) -> (i32, i32) {
    %c1_i32 = arith.constant 1 : i32
    %0 = arith.muli %arg0, %c1_i32 : i32
    %1 = arith.addi %0, %arg1 : i32
    %c0_i32 = arith.constant 0 : i32
    %2 = arith.minsi %1, %c0_i32 : i32
    %c0_i32_0 = arith.constant 0 : i32
    %c0_i32_1 = arith.constant 0 : i32
    return %2, %c0_i32_0 : i32, i32
  }
  func.func @transform_1(%arg0: i32, %arg1: i32) -> (i32, i32) {
    %c1_i32 = arith.constant 1 : i32
    %0 = arith.muli %arg0, %c1_i32 : i32
    %1 = arith.addi %0, %arg1 : i32
    %c0_i32 = arith.constant 0 : i32
    %2 = arith.minsi %1, %c0_i32 : i32
    %c0_i32_0 = arith.constant 0 : i32
    %c0_i32_1 = arith.constant 0 : i32
    return %2, %c0_i32_0 : i32, i32
  }
  func.func @transform_2(%arg0: i32, %arg1: i32) -> (i32, i32, i32) {
    %c0_i32 = arith.constant 0 : i32
    %c0_i32_0 = arith.constant 0 : i32
    %c0_i32_1 = arith.constant 0 : i32
    return %arg0, %c0_i32, %c0_i32_0 : i32, i32, i32
  }
}

</mosaic_0001>

<bundles_post_ra>
// kernel: tpu_custom_call.1
= control target key start
LH: loop header
LB: loop body
LE: loop exit
PB: predicated region body
PF: predicated region fallthrough
CT: control target
= control target key end

     0   :  { %vm81_vm0 = vcmask 130048   ;;  %s224_s0 = inlined_call_operand.vmem [shape: f32[8,16], index: 0, kind: input, shape index: {}]   ;;  %s225_s1 = inlined_call_operand.vmem [shape: s32[8,1], index: 1, kind: input, shape index: {}]   ;;  %s226_s2 = inlined_call_operand.hbm [shape: f32[1,8,128], index: 2, kind: output, shape index: {}]  }
   0x1   :  { %v72_v0 = vld [vmem:[%s224_s0] sm:$0xff] }
   0x2   :  { %7 = vsyncpa [#allocation4], 0  ;;  %v82_v1 = vsel %vm81_vm0, %v72_v0, -inf  ;;  %v185_v2 = vmov 0   ;;  %v73_v3 = vld [vmem:[%s225_s1] sm:$0xff]  ;;  %v86_v7 = vlaneseq  ;;  %vm70_vm2 = vcmask 7168  }
   0x3   :  { %156 = vset.pattern.permute.xlu0 %v185_v2  ;;  %v186_v14 = vmov 0.0   ;;  %s187_s0 = smov [#allocation3]  }
   0x4   :  { %83 = vmax.xlane.f32.xlu0 %v82_v1  ;;  %v87_v8 = vand.u32 127, %v86_v7  ;;  %71 = vst.msk [vmem:[#allocation2] sm:$0xff] %vm70_vm2, %v186_v14  ;;  %s131_s1 = sshll.u32 %s187_s0, 4  ;;  %s132_s1 = int_to_ptr.vmem [resolvable:$true] %s131_s1 }
   0x5   :  { %s161_s14 = scalar_lea.vmem %s132_s1, 128  ;;  %p166_p1 = scmp.lt.s32.totalorder %s132_s1, %s132_s1 }
   0x6   :  { %p162_p0 = scmp.ne.s32.totalorder %s132_s1, %s161_s14  ;;  %p167_p2 = scmp.lt.s32.totalorder %s161_s14, %s161_s14 }
   0x8   :  { %p168_p3 = por %p167_p2, %p166_p1 }
   0xa   :  { %p169_p4 = pnand %p168_p3, %p162_p0 }
   0xb   :  { %v104_v19 = vld [vmem:[#allocation2] sm:$0xff] }
  0x1a   :  { %89 = vperm.xlu0 %156, %v73_v3  }
  0x91   :  { %v84_v4 = vpop.xlane.xlu0 %83 }
  0x92   :  { %v85_v5 = vsub.f32 %v72_v0, %v84_v4 }
  0x94   :  { %v96_v6 = vmul.f32 1.442695, %v85_v5 }
  0x96   :  { %157 = vpow2.f32 %v96_v6 }
  0x99   :  { %v90_v9 = vpop.permute.xlu0 %89 }
  0x9a   :  { %vm91_vm1 = vcmp.eq.s32.totalorder %v87_v8, %v90_v9 }
  0x9b   :  { %v92_v12 = vsel %vm91_vm1, %v85_v5, 0.0 }
  0x9c   :  { %v93_v13 = vsel %vm81_vm0, %v92_v12, 0.0 }
  0xa0   :  { %v158_v10 = vpop.eup %157 }
  0xa1   :  { %v98_v11 = vsel %vm81_vm0, %v158_v10, 0.0 }
  0xa2   :  { %99 = vadd.xlane.f32.xlu1 %v98_v11 }
  0xa6   :  { %94 = vadd.xlane.f32.xlu1 %v93_v13 }
 0x12f   :  { %v100_v15 = vpop.xlane.xlu1 %99 }
 0x130   :  { %159 = vlog2.f32 %v100_v15 }
 0x133   :  { %v95_v18 = vpop.xlane.xlu1 %94 }
 0x13a   :  { %v160_v16 = vpop.eup %159 }
 0x13b   :  { %v102_v17 = vmul.f32 0.6931472, %v160_v16 }
 0x13d   :  { %v103_v20 = vsub.f32 %v95_v18, %v102_v17 }
 0x13f   :  { %v106_v21 = vadd.f32 %v104_v19, %v103_v20 }
 0x141   :  { %108 = vst.msk [vmem:[#allocation2] sm:$0xff] %vm70_vm2, %v106_v21 }
 0x148   :  { %v112_v22 = vld [vmem:[#allocation2] sm:$0xff] }
 0x149   :  { %v113_v23 = vsel %vm70_vm2, %v112_v22, 0.0 }
 0x14a   :  { %114 = vadd.xlane.f32.xlu1 %v113_v23 }
 0x1d7   :  { %v115_v24 = vpop.xlane.xlu1 %114 }
 0x1d8   :  { %v116_v25 = vrot.slane %v115_v24, 4 }
 0x1da   :  { %v117_v26 = vadd.f32 %v116_v25, %v115_v24 }
 0x1dc   :  { %v118_v27 = vrot.slane %v117_v26, 2 }
 0x1de   :  { %v119_v28 = vadd.f32 %v118_v27, %v117_v26 }
 0x1e0   :  { %v120_v29 = vrot.slane %v119_v28, 1 }
 0x1e2   :  { %v121_v30 = vadd.f32 %v120_v29, %v119_v28 }
 0x1e4   :  { %151 = vpush %v121_v30 }
 0x215   :  { %s152_s13 = spop %151 }
 0x216   :  { %v123_v31 = vstv %s152_s13 }
 0x217   :  { %124 = vst [vmem:[#allocation3] sm:$0xff] %v123_v31 }
 0x218   :  { %172 = shalt.err (!%p169_p4)
}
 0x219   :  { %s173_s17 = scalar_lea.hbm %s226_s2, 128 }
 0x21a   :  { %p174_p5 = scmp.ne.s32.totalorder %s226_s2, %s173_s17  ;;  %p177_p6 = scmp.lt.u32.totalorder %s173_s17, %s226_s2 }
 0x21c   :  { %p179_p7 = pnand %p177_p6, %p174_p5 }
 0x21e   :  { %182 = shalt.err (!%p179_p7)
}
 0x21f   :  { %134 = dma.vmem_to_hbm [thread:$0]  %s132_s1, 128, %s226_s2, [#allocation4]  }
 0x220   :  { %183 = dma.done.wait [#allocation4], 128  }
 0x221   :  { %184 = vsyncadd [#allocation4], 4294967168 }
 0x222   :  { %138 = vsyncpa [#allocation4], 1 }

</bundles_post_ra>
